<compile_context>
chip_gen: v6e
topology: v6e:2x2x1
jax: 0.10.0
libtpu: 0.0.40
codegen_flags: <defaults>
</compile_context>

<pallas_src>
import functools

import jax
import jax.numpy as jnp
from jax import lax
from jax.experimental import pallas as pl
from jax.experimental.pallas import tpu as pltpu


def _bce_loss_kernel(x_ref, t_ref, acc_ref, *, n_valid, tile_n, num_ch, hw,
                     blocks_per_part, need_mask):
    p = pl.program_id(0)   # TensorCore partition       ("parallel")
    b = pl.program_id(1)   # batch block in partition   ("arbitrary" / reduce)

    @pl.when(b == 0)
    def _():
        acc_ref[...] = jnp.zeros_like(acc_ref)

    x = x_ref[...].astype(jnp.float32)        # (tile_n, C*HW)
    t = t_ref[...].astype(jnp.float32)

    # BCELoss with PyTorch's log clamp at -100, rewritten to save one multiply:
    #   -(t*log x + (1-t)*log(1-x)) == -(t*(log x - log(1-x)) + log(1-x))
    log_x = jnp.maximum(jnp.log(x), -100.0)
    log_1mx = jnp.maximum(jnp.log(1.0 - x), -100.0)
    bce = -(t * (log_x - log_1mx) + log_1mx)

    # Raw per-batch-row sums; all mean scale factors are folded in later.
    bce_row = jnp.sum(bce, axis=1, keepdims=True)                # (tile_n, 1)

    # Per-(n, c) spatial sums of x via static, HW-aligned lane slices.
    # TODO(synk): for very large C switch this Python unroll to a reshape- or
    # matmul-based channel reduction to keep code size bounded.
    w_cols = [jnp.sum(x[:, c * hw:(c + 1) * hw], axis=1, keepdims=True)
              for c in range(num_ch)]
    w_sum = jnp.concatenate(w_cols, axis=1)                      # (tile_n, C)

    #   loss[c] = 1/(C*HW) * sum_n bce_sum[n] * (1 - w_sum[n, c] / HW)
    per_row = bce_row * (1.0 - w_sum * (1.0 / hw))               # (tile_n, C)

    if need_mask:
        # Mask rows beyond the true batch size (partial tail block: the DMA
        # copies only the valid rows; trailing buffer rows are unspecified and
        # may hold NaN/Inf garbage -- the select discards them safely).
        row0 = (p * blocks_per_part + b) * tile_n
        row_ids = lax.broadcasted_iota(jnp.int32, (tile_n, 1), 0) + row0
        per_row = jnp.where(row_ids < n_valid, per_row, 0.0)

    contrib = jnp.sum(per_row, axis=0, keepdims=True)            # (1, C)
    # acc block is (1, 8, C) so its trailing dims satisfy the (8,128)/full-dim
    # rule; broadcast over the 8 sublanes (the wrapper reads only row 0).
    acc_ref[...] += contrib[None]


def bce_loss_pallas(input_scale, target_scale, *, tile_n=None):
    """input_scale, target_scale: [N, C, H, W]; returns the [C] total loss."""
    N, C, H, W = input_scale.shape
    HW = H * W
    CHW = C * HW

    # Lane-dense layout: flatten (C, H, W) onto the lane axis.
    x = input_scale.reshape(N, CHW).astype(jnp.float32)
    t = target_scale.reshape(N, CHW).astype(jnp.float32)

    # Only tiny batches (< one sublane) get zero-padded (negligible copy);
    # larger batches are streamed unpadded and the tail block is masked,
    # avoiding an extra full HBM copy of both inputs.
    n_rows = N
    if n_rows < 8:
        pad = 8 - n_rows
        x = jnp.pad(x, ((0, pad), (0, 0)))
        t = jnp.pad(t, ((0, pad), (0, 0)))
        n_rows = 8
    n_floor = (n_rows // 8) * 8   # largest sublane-aligned tile that fits

    # Batch tile: ~2 MiB per input block => ~8 MiB VMEM with double buffering
    # of both inputs (fits v5e/v6e/v7x scoped-VMEM defaults); multiple of 8.
    if tile_n is None:
        row_bytes = CHW * 4
        tile_n = max(8, min(1024, ((2 * 1024 * 1024) // row_bytes) // 8 * 8))
    tile_n = max(8, min((int(tile_n) // 8) * 8, n_floor))

    grid_n = -(-n_rows // tile_n)
    # Split the batch reduction across 2 TensorCores when it divides evenly
    # (v7x megacore win; runs sequentially and stays correct on 1-TC chips).
    num_parts = 2 if (grid_n >= 2 and grid_n % 2 == 0) else 1
    blocks_per_part = grid_n // num_parts

    # Zero-padded rows contribute exactly 0 (log clamp + t==0), so the runtime
    # mask is only needed when the grid covers rows past the array itself.
    need_mask = (grid_n * tile_n) > n_rows

    kernel = functools.partial(
        _bce_loss_kernel, n_valid=N, tile_n=tile_n, num_ch=C, hw=HW,
        blocks_per_part=blocks_per_part, need_mask=need_mask)

    cost = pl.CostEstimate(
        flops=8 * N * CHW,
        transcendentals=2 * N * CHW,
        bytes_accessed=2 * N * CHW * 4 + num_parts * 8 * C * 4)

    acc = pl.pallas_call(
        kernel,
        out_shape=jax.ShapeDtypeStruct((num_parts, 8, C), jnp.float32),
        grid_spec=pltpu.PrefetchScalarGridSpec(
            num_scalar_prefetch=0,
            grid=(num_parts, blocks_per_part),
            in_specs=[
                pl.BlockSpec((tile_n, CHW),
                             lambda p, b: (p * blocks_per_part + b, 0)),
                pl.BlockSpec((tile_n, CHW),
                             lambda p, b: (p * blocks_per_part + b, 0)),
            ],
            out_specs=pl.BlockSpec((1, 8, C), lambda p, b: (p, 0, 0)),
        ),
        compiler_params=pltpu.CompilerParams(
            dimension_semantics=("parallel", "arbitrary"),
        ),
        cost_estimate=cost,
    )(x, t)

    # Epilogue: fold in BCELoss' 1/(C*HW) 'mean' factor; sum per-core partials.
    return jnp.sum(acc[:, 0, :], axis=0) * (1.0 / (C * HW))


def bce_loss_ref(x, t):
    """Pure-JAX reference replicating the PyTorch module."""
    x = x.astype(jnp.float32)
    t = t.astype(jnp.float32)
    weight = jnp.mean(x, axis=(2, 3))                             # [N, C]
    log_x = jnp.maximum(jnp.log(x), -100.0)
    log_1mx = jnp.maximum(jnp.log(1.0 - x), -100.0)
    bce = -(t * log_x + (1.0 - t) * log_1mx)
    bce_mean = jnp.mean(bce, axis=(1, 2, 3))                      # [N]
    return jnp.sum((1.0 - weight) * bce_mean[:, None], axis=0)    # [C]


if __name__ == "__main__":
    def make_inputs(n, c, h, w, key):
        k1, k2 = jax.random.split(key)
        xx = jax.nn.sigmoid(jax.random.normal(k1, (n, c, h, w), dtype=jnp.float32))
        tt = jax.random.uniform(k2, (n, c, h, w), dtype=jnp.float32)
        return xx, tt

    k0, k1, k2 = jax.random.split(jax.random.PRNGKey(0), 3)

    # Primary small-shape check (batch=2, channels=4, spatial=16).
    x, t = make_inputs(2, 4, 16, 16, k0)
    out = jax.block_until_ready(bce_loss_pallas(x, t))
    ref = jax.block_until_ready(bce_loss_ref(x, t))
    assert out.shape == (4,)
    assert jnp.allclose(out, ref, rtol=1e-5, atol=1e-5), (out, ref)

    # Unpadded batch with a partial (masked) tail block + 2-way parallel split.
    x, t = make_inputs(20, 4, 16, 16, k1)
    out = bce_loss_pallas(x, t, tile_n=16)
    assert jnp.allclose(out, bce_loss_ref(x, t), rtol=1e-5, atol=1e-5)

    # Multi-block accumulation along the "arbitrary" axis (odd grid -> 1 part).
    x, t = make_inputs(37, 4, 16, 16, k2)
    out = bce_loss_pallas(x, t, tile_n=8)
    assert jnp.allclose(out, bce_loss_ref(x, t), rtol=1e-5, atol=1e-5)

    jax.block_until_ready(out)
    print("KERNEL_OK")
</pallas_src>

<mosaic_0001>
module attributes {stable_mosaic.version = 11 : i64} {
  func.func @_bce_loss_kernel(%arg0: i32, %arg1: i32, %arg2: memref<8x1024xf32, #tpu.memory_space<vmem>>, %arg3: memref<8x1024xf32, #tpu.memory_space<vmem>>, %arg4: memref<1x8x4xf32, #tpu.memory_space<vmem>>) attributes {dimension_semantics = [#tpu.dimension_semantics<parallel>, #tpu.dimension_semantics<arbitrary>], iteration_bounds = array<i64: 1, 1>, scalar_prefetch = 0 : i64, scratch_operands = 0 : i64, tpu.core_type = #tpu.core_type<tc>, window_params = [{transform_indices = @transform_0, window_bounds = array<i64: 8, 1024>}, {transform_indices = @transform_1, window_bounds = array<i64: 8, 1024>}, {transform_indices = @transform_2, window_bounds = array<i64: 1, 8, 4>}]} {
    %c0_i32 = arith.constant 0 : i32
    %0 = arith.cmpi eq, %arg1, %c0_i32 : i32
    %1 = arith.extui %0 : i1 to i32
    %c0_i32_0 = arith.constant 0 : i32
    %2 = arith.cmpi ne, %1, %c0_i32_0 : i32
    scf.if %2 {
      %cst_21 = arith.constant 0.000000e+00 : f32
      %46 = vector.broadcast %cst_21 : f32 to vector<1x8x4xf32>
      %c0_22 = arith.constant 0 : index
      %c0_23 = arith.constant 0 : index
      %c0_24 = arith.constant 0 : index
      %47 = vector.load %arg4[%c0_22, %c0_23, %c0_24] : memref<1x8x4xf32, #tpu.memory_space<vmem>>, vector<1x8x4xf32>
      tpu.vector_store %arg4[%c0_22, %c0_23, %c0_24], %46 {strides = array<i32>} : memref<1x8x4xf32, #tpu.memory_space<vmem>>, vector<1x8x4xf32>,
    } else {
    }
    %c0 = arith.constant 0 : index
    %c0_1 = arith.constant 0 : index
    %3 = vector.load %arg2[%c0, %c0_1] : memref<8x1024xf32, #tpu.memory_space<vmem>>, vector<8x1024xf32>
    %c0_2 = arith.constant 0 : index
    %c0_3 = arith.constant 0 : index
    %4 = vector.load %arg3[%c0_2, %c0_3] : memref<8x1024xf32, #tpu.memory_space<vmem>>, vector<8x1024xf32>
    %5 = math.log %3 : vector<8x1024xf32>
    %cst = arith.constant -1.000000e+02 : f32
    %6 = vector.broadcast %cst : f32 to vector<8x1024xf32>
    %7 = arith.maximumf %5, %6 : vector<8x1024xf32>
    %cst_4 = arith.constant 1.000000e+00 : f32
    %8 = vector.broadcast %cst_4 : f32 to vector<8x1024xf32>
    %9 = arith.subf %8, %3 : vector<8x1024xf32>
    %10 = math.log %9 : vector<8x1024xf32>
    %cst_5 = arith.constant -1.000000e+02 : f32
    %11 = vector.broadcast %cst_5 : f32 to vector<8x1024xf32>
    %12 = arith.maximumf %10, %11 : vector<8x1024xf32>
    %13 = arith.subf %7, %12 : vector<8x1024xf32>
    %14 = arith.mulf %4, %13 : vector<8x1024xf32>
    %15 = arith.addf %14, %12 : vector<8x1024xf32>
    %cst_6 = arith.constant 0.000000e+00 : f32
    %16 = vector.broadcast %cst_6 : f32 to vector<8x1024xf32>
    %17 = arith.subf %16, %15 : vector<8x1024xf32>
    %cst_7 = arith.constant dense<0.000000e+00> : vector<8xf32>
    %18 = vector.multi_reduction <add>, %17, %cst_7 [1] : vector<8x1024xf32> to vector<8xf32>
    %19 = vector.shape_cast %18 : vector<8xf32> to vector<8x1xf32>
    %20 = vector.extract_strided_slice %3 {offsets = [0, 0], sizes = [8, 256], strides = [1, 1]} : vector<8x1024xf32> to vector<8x256xf32>
    %cst_8 = arith.constant dense<0.000000e+00> : vector<8xf32>
    %21 = vector.multi_reduction <add>, %20, %cst_8 [1] : vector<8x256xf32> to vector<8xf32>
    %22 = vector.shape_cast %21 : vector<8xf32> to vector<8x1xf32>
    %23 = vector.extract_strided_slice %3 {offsets = [0, 256], sizes = [8, 256], strides = [1, 1]} : vector<8x1024xf32> to vector<8x256xf32>
    %cst_9 = arith.constant dense<0.000000e+00> : vector<8xf32>
    %24 = vector.multi_reduction <add>, %23, %cst_9 [1] : vector<8x256xf32> to vector<8xf32>
    %25 = vector.shape_cast %24 : vector<8xf32> to vector<8x1xf32>
    %26 = vector.extract_strided_slice %3 {offsets = [0, 512], sizes = [8, 256], strides = [1, 1]} : vector<8x1024xf32> to vector<8x256xf32>
    %cst_10 = arith.constant dense<0.000000e+00> : vector<8xf32>
    %27 = vector.multi_reduction <add>, %26, %cst_10 [1] : vector<8x256xf32> to vector<8xf32>
    %28 = vector.shape_cast %27 : vector<8xf32> to vector<8x1xf32>
    %29 = vector.extract_strided_slice %3 {offsets = [0, 768], sizes = [8, 256], strides = [1, 1]} : vector<8x1024xf32> to vector<8x256xf32>
    %cst_11 = arith.constant dense<0.000000e+00> : vector<8xf32>
    %30 = vector.multi_reduction <add>, %29, %cst_11 [1] : vector<8x256xf32> to vector<8xf32>
    %31 = vector.shape_cast %30 : vector<8xf32> to vector<8x1xf32>
    %32 = tpu.concatenate %22, %25, %28, %31 in 1 : vector<8x1xf32>, vector<8x1xf32>, vector<8x1xf32>, vector<8x1xf32> -> vector<8x4xf32>
    %cst_12 = arith.constant 3.906250e-03 : f32
    %33 = vector.broadcast %cst_12 : f32 to vector<8x4xf32>
    %34 = arith.mulf %32, %33 : vector<8x4xf32>
    %cst_13 = arith.constant 1.000000e+00 : f32
    %35 = vector.broadcast %cst_13 : f32 to vector<8x4xf32>
    %36 = arith.subf %35, %34 : vector<8x4xf32>
    %37 = vector.broadcast %19 : vector<8x1xf32> to vector<8x4xf32>
    %38 = arith.mulf %37, %36 : vector<8x4xf32>
    %cst_14 = arith.constant dense<0.000000e+00> : vector<4xf32>
    %39 = vector.multi_reduction <add>, %38, %cst_14 [0] : vector<8x4xf32> to vector<4xf32>
    %40 = vector.shape_cast %39 : vector<4xf32> to vector<1x4xf32>
    %c0_15 = arith.constant 0 : index
    %c0_16 = arith.constant 0 : index
    %c0_17 = arith.constant 0 : index
    %41 = vector.load %arg4[%c0_15, %c0_16, %c0_17] : memref<1x8x4xf32, #tpu.memory_space<vmem>>, vector<1x8x4xf32>
    %42 = vector.shape_cast %40 : vector<1x4xf32> to vector<1x1x4xf32>
    %43 = vector.broadcast %42 : vector<1x1x4xf32> to vector<1x8x4xf32>
    %44 = arith.addf %41, %43 : vector<1x8x4xf32>
    %c0_18 = arith.constant 0 : index
    %c0_19 = arith.constant 0 : index
    %c0_20 = arith.constant 0 : index
    %45 = vector.load %arg4[%c0_18, %c0_19, %c0_20] : memref<1x8x4xf32, #tpu.memory_space<vmem>>, vector<1x8x4xf32>
    tpu.vector_store %arg4[%c0_18, %c0_19, %c0_20], %44 {strides = array<i32>} : memref<1x8x4xf32, #tpu.memory_space<vmem>>, vector<1x8x4xf32>,
    return
  }
  func.func @transform_0(%arg0: i32, %arg1: i32) -> (i32, i32) {
    %c1_i32 = arith.constant 1 : i32
    %0 = arith.muli %arg0, %c1_i32 : i32
    %1 = arith.addi %0, %arg1 : i32
    %c0_i32 = arith.constant 0 : i32
    %c0_i32_0 = arith.constant 0 : i32
    return %1, %c0_i32 : i32, i32
  }
  func.func @transform_1(%arg0: i32, %arg1: i32) -> (i32, i32) {
    %c1_i32 = arith.constant 1 : i32
    %0 = arith.muli %arg0, %c1_i32 : i32
    %1 = arith.addi %0, %arg1 : i32
    %c0_i32 = arith.constant 0 : i32
    %c0_i32_0 = arith.constant 0 : i32
    return %1, %c0_i32 : i32, i32
  }
  func.func @transform_2(%arg0: i32, %arg1: i32) -> (i32, i32, i32) {
    %c0_i32 = arith.constant 0 : i32
    %c0_i32_0 = arith.constant 0 : i32
    %c0_i32_1 = arith.constant 0 : i32
    return %arg0, %c0_i32, %c0_i32_0 : i32, i32, i32
  }
}

</mosaic_0001>

<bundles_post_ra>
// kernel: tpu_custom_call.1
= control target key start
LH: loop header
LB: loop body
LE: loop exit
PB: predicated region body
PF: predicated region fallthrough
CT: control target
= control target key end

     0   :  { %7 = vsyncpa [#allocation3], 0  ;;  %s320_s0 = inlined_call_operand.hbm [shape: f32[8,1024], index: 0, kind: input, shape index: {}]   ;;  %s321_s1 = inlined_call_operand.hbm [shape: f32[8,1024], index: 1, kind: input, shape index: {}]   ;;  %s322_s2 = inlined_call_operand.vmem [shape: f32[1,8,4], index: 2, kind: output, shape index: {}]  }
   0x1   :  { %8 = vsyncpa [#allocation5], 0  ;;  %s281_s9 = smov [#allocation2]   ;;  %s282_s11 = smov [#allocation4]  }
   0x2   :  { %s19_s10 = sshll.u32 %s281_s9, 4  ;;  %s33_s12 = sshll.u32 %s282_s11, 4  ;;  %s20_s10 = int_to_ptr.vmem [resolvable:$true] %s19_s10  ;;  %s34_s12 = int_to_ptr.vmem [resolvable:$true] %s33_s12 }
   0x3   :  { %s245_s13 = scalar_lea.vmem %s20_s10, 1024  ;;  %p250_p1 = scmp.lt.s32.totalorder %s20_s10, %s20_s10 }
   0x4   :  { %p246_p0 = scmp.ne.s32.totalorder %s20_s10, %s245_s13  ;;  %p251_p2 = scmp.lt.s32.totalorder %s245_s13, %s245_s13 }
   0x6   :  { %p252_p3 = por %p251_p2, %p250_p1 }
   0x8   :  { %p253_p4 = pnand %p252_p3, %p246_p0 }
   0xa   :  { %256 = shalt.err (!%p253_p4)
}
   0xb   :  { %22 = dma.hbm_to_vmem [thread:$0]  %s320_s0, 1024, %s20_s10, [#allocation3]  }
   0xc   :  { %s265_s16 = scalar_lea.vmem %s34_s12, 1024  ;;  %p270_p6 = scmp.lt.s32.totalorder %s34_s12, %s34_s12 }
   0xd   :  { %p266_p5 = scmp.ne.s32.totalorder %s34_s12, %s265_s16  ;;  %p271_p7 = scmp.lt.s32.totalorder %s265_s16, %s265_s16 }
   0xf   :  { %p272_p8 = por %p271_p7, %p270_p6 }
  0x11   :  { %p273_p9 = pnand %p272_p8, %p266_p5 }
  0x13   :  { %276 = shalt.err (!%p273_p9)
}
  0x14   :  { %36 = dma.hbm_to_vmem [thread:$0]  %s321_s1, 1024, %s34_s12, [#allocation5]  }
  0x15   :  { %277 = dma.done.wait [#allocation3], 1024  }
  0x16   :  { %278 = vsyncadd [#allocation3], 4294966272 }
  0x17   :  { %279 = dma.done.wait [#allocation5], 1024  }
  0x18   :  { %280 = vsyncadd [#allocation5], 4294966272  ;;  %v51_v0 = vld [vmem:[#allocation2] sm:$0xff]  ;;  %v52_v1 = vld [vmem:[#allocation2 + $0x8] sm:$0xff]  ;;  %vm49_vm0 = vcmask 31744   ;;  %v283_v42 = vmov 0.0  }
  0x19   :  { %205 = vlog2.f32 %v52_v1  ;;  %v92_v2 = vsub.f32 1.0, %v52_v1  ;;  %v164_v3 = vadd.f32 %v52_v1, %v51_v0  ;;  %v91_v4 = vsub.f32 1.0, %v51_v0  ;;  %v55_v5 = vld [vmem:[#allocation2 + $0x20] sm:$0xff]  ;;  %v56_v6 = vld [vmem:[#allocation2 + $0x28] sm:$0xff]  ;;  %v53_v9 = vld [vmem:[#allocation2 + $0x10] sm:$0xff]  ;;  %50 = vst.msk [vmem:[%s322_s2] sm:$0xff] %vm49_vm0, %v283_v42 }
  0x1a   :  { %207 = vlog2.f32 %v51_v0  ;;  %v96_v7 = vsub.f32 1.0, %v56_v6  ;;  %v170_v8 = vadd.f32 %v56_v6, %v55_v5  ;;  %v54_v10 = vld [vmem:[#allocation2 + $0x18] sm:$0xff]  ;;  %v57_v12 = vld [vmem:[#allocation2 + $0x30] sm:$0xff]  ;;  %v95_v14 = vsub.f32 1.0, %v55_v5  ;;  %v60_v35 = vld [vmem:[#allocation4 + $0x8] sm:$0xff] }
  0x1b   :  { %209 = vlog2.f32 %v92_v2  ;;  %165 = vadd.xlane.f32.xlu0 %v164_v3  ;;  %v167_v11 = vadd.f32 %v54_v10, %v53_v9  ;;  %v58_v13 = vld [vmem:[#allocation2 + $0x38] sm:$0xff]  ;;  %v93_v16 = vsub.f32 1.0, %v53_v9  ;;  %v94_v17 = vsub.f32 1.0, %v54_v10  ;;  %v59_v39 = vld [vmem:[#allocation4] sm:$0xff] }
  0x1c   :  { %211 = vlog2.f32 %v91_v4  ;;  %171 = vadd.xlane.f32.xlu1 %v170_v8  ;;  %v173_v15 = vadd.f32 %v58_v13, %v57_v12  ;;  %v97_v18 = vsub.f32 1.0, %v57_v12  ;;  %v98_v19 = vsub.f32 1.0, %v58_v13  ;;  %v63_v1 = vld [vmem:[#allocation4 + $0x20] sm:$0xff]  ;;  %v61_v4 = vld [vmem:[#allocation4 + $0x10] sm:$0xff] }
  0x1d   :  { %213 = vlog2.f32 %v56_v6  ;;  %vm176_vm1 = vcmask 7168   ;;  %vm178_vm2 = vcmask 15360   ;;  %vm180_vm3 = vcmask 23552  }
  0x1e   :  { %215 = vlog2.f32 %v96_v7 }
  0x1f   :  { %217 = vlog2.f32 %v55_v5  ;;  %168 = vadd.xlane.f32.xlu0 %v167_v11 }
  0x20   :  { %219 = vlog2.f32 %v95_v14  ;;  %174 = vadd.xlane.f32.xlu1 %v173_v15 }
  0x21   :  { %221 = vlog2.f32 %v53_v9 }
  0x22   :  { %223 = vlog2.f32 %v54_v10 }
  0x23   :  { %225 = vlog2.f32 %v93_v16  ;;  %v62_v16 = vld [vmem:[#allocation4 + $0x18] sm:$0xff] }
  0x24   :  { %227 = vlog2.f32 %v94_v17 }
  0x25   :  { %229 = vlog2.f32 %v57_v12  ;;  %v64_v12 = vld [vmem:[#allocation4 + $0x28] sm:$0xff] }
  0x26   :  { %v206_v20 = vpop.eup %205  ;;  %231 = vlog2.f32 %v58_v13 }
  0x27   :  { %v208_v21 = vpop.eup %207  ;;  %v70_v22 = vmul.f32 0.6931472, %v206_v20  ;;  %233 = vlog2.f32 %v97_v18 }
  0x28   :  { %v210_v23 = vpop.eup %209  ;;  %v68_v24 = vmul.f32 0.6931472, %v208_v21  ;;  %235 = vlog2.f32 %v98_v19 }
  0x29   :  { %v212_v25 = vpop.eup %211  ;;  %v84_v26 = vmax.f32 %v70_v22, -100.0  ;;  %v102_v27 = vmul.f32 0.6931472, %v210_v23 }
  0x2a   :  { %v214_v28 = vpop.eup %213  ;;  %v83_v29 = vmax.f32 %v68_v24, -100.0  ;;  %v100_v30 = vmul.f32 0.6931472, %v212_v25  ;;  %v65_v25 = vld [vmem:[#allocation4 + $0x30] sm:$0xff] }
  0x2b   :  { %v216_v31 = vpop.eup %215  ;;  %v116_v32 = vmax.f32 %v102_v27, -100.0  ;;  %v78_v33 = vmul.f32 0.6931472, %v214_v28 }
  0x2c   :  { %v218_v34 = vpop.eup %217  ;;  %v115_v36 = vmax.f32 %v100_v30, -100.0  ;;  %v305_v37 = vmul.f32 0.6931472, %v216_v31 }
  0x2d   :  { %v220_v38 = vpop.eup %219  ;;  %v124_v40 = vsub.f32 %v84_v26, %v116_v32  ;;  %v76_v41 = vmul.f32 0.6931472, %v218_v34  ;;  %v88_v45 = vmax.f32 %v78_v33, -100.0 }
  0x2e   :  { %v222_v43 = vpop.eup %221  ;;  %v123_v44 = vsub.f32 %v83_v29, %v115_v36  ;;  %v108_v46 = vmul.f32 0.6931472, %v220_v38  ;;  %v120_v49 = vmax.f32 %v305_v37, -100.0  ;;  %v66_v29 = vld [vmem:[#allocation4 + $0x38] sm:$0xff] }
  0x2f   :  { %v224_v47 = vpop.eup %223  ;;  %v132_v48 = vmul.f32 %v124_v40, %v60_v35  ;;  %v87_v50 = vmax.f32 %v76_v41, -100.0  ;;  %v72_v51 = vmul.f32 0.6931472, %v222_v43 }
  0x30   :  { %v226_v52 = vpop.eup %225  ;;  %v131_v53 = vmul.f32 %v123_v44, %v59_v39  ;;  %v119_v54 = vmax.f32 %v108_v46, -100.0  ;;  %v74_v55 = vmul.f32 0.6931472, %v224_v47  ;;  %v128_v3 = vsub.f32 %v88_v45, %v120_v49 }
  0x31   :  { %v228_v56 = vpop.eup %227  ;;  %v140_v57 = vadd.f32 %v132_v48, %v116_v32  ;;  %v85_v58 = vmax.f32 %v72_v51, -100.0  ;;  %v104_v59 = vmul.f32 0.6931472, %v226_v52 }
  0x32   :  { %v230_v60 = vpop.eup %229  ;;  %v139_v61 = vadd.f32 %v131_v53, %v115_v36  ;;  %v127_v62 = vsub.f32 %v87_v50, %v119_v54  ;;  %v86_v63 = vmax.f32 %v74_v55, -100.0  ;;  %v106_v0 = vmul.f32 0.6931472, %v228_v56 }
  0x33   :  { %v232_v2 = vpop.eup %231  ;;  %v117_v5 = vmax.f32 %v104_v59, -100.0  ;;  %v80_v6 = vmul.f32 0.6931472, %v230_v60  ;;  %v148_v8 = vsub.f32 0.0, %v140_v57  ;;  %v136_v24 = vmul.f32 %v128_v3, %v64_v12 }
  0x34   :  { %v234_v7 = vpop.eup %233  ;;  %v147_v9 = vsub.f32 0.0, %v139_v61  ;;  %v118_v10 = vmax.f32 %v106_v0, -100.0  ;;  %v82_v11 = vmul.f32 0.6931472, %v232_v2  ;;  %v135_v18 = vmul.f32 %v127_v62, %v63_v1 }
  0x35   :  { %v236_v13 = vpop.eup %235  ;;  %v125_v14 = vsub.f32 %v85_v58, %v117_v5  ;;  %v89_v15 = vmax.f32 %v80_v6, -100.0  ;;  %v112_v17 = vmul.f32 0.6931472, %v234_v7  ;;  %v144_v37 = vadd.f32 %v136_v24, %v120_v49 }
  0x36   :  { %v126_v19 = vsub.f32 %v86_v63, %v118_v10  ;;  %v90_v20 = vmax.f32 %v82_v11, -100.0  ;;  %v114_v21 = vmul.f32 0.6931472, %v236_v13  ;;  %v143_v31 = vadd.f32 %v135_v18, %v119_v54 }
  0x37   :  { %v133_v22 = vmul.f32 %v125_v14, %v61_v4  ;;  %v121_v23 = vmax.f32 %v112_v17, -100.0  ;;  %v155_v32 = vadd.f32 %v148_v8, %v147_v9  ;;  %v152_v44 = vsub.f32 0.0, %v144_v37 }
  0x38   :  { %v122_v26 = vmax.f32 %v114_v21, -100.0  ;;  %v134_v27 = vmul.f32 %v126_v19, %v62_v16  ;;  %v151_v41 = vsub.f32 0.0, %v143_v31 }
  0x39   :  { %v141_v28 = vadd.f32 %v133_v22, %v117_v5  ;;  %v129_v30 = vsub.f32 %v89_v15, %v121_v23  ;;  %v193_v5 = vld [vmem:[%s322_s2] sm:$0xff] }
  0x3a   :  { %v130_v33 = vsub.f32 %v90_v20, %v122_v26  ;;  %v142_v34 = vadd.f32 %v134_v27, %v118_v10 }
  0x3b   :  { %v149_v35 = vsub.f32 0.0, %v141_v28  ;;  %v137_v36 = vmul.f32 %v129_v30, %v65_v25 }
  0x3c   :  { %v138_v38 = vmul.f32 %v130_v33, %v66_v29  ;;  %v150_v39 = vsub.f32 0.0, %v142_v34 }
  0x3d   :  { %v145_v40 = vadd.f32 %v137_v36, %v121_v23  ;;  %v156_v42 = vadd.f32 %v155_v32, %v149_v35 }
  0x3e   :  { %v146_v43 = vadd.f32 %v138_v38, %v122_v26 }
  0x3f   :  { %v157_v45 = vadd.f32 %v156_v42, %v150_v39  ;;  %v153_v46 = vsub.f32 0.0, %v145_v40 }
  0x40   :  { %v154_v48 = vsub.f32 0.0, %v146_v43 }
  0x41   :  { %v158_v47 = vadd.f32 %v157_v45, %v151_v41 }
  0x43   :  { %v159_v50 = vadd.f32 %v158_v47, %v152_v44 }
  0x45   :  { %v160_v51 = vadd.f32 %v159_v50, %v153_v46 }
  0x47   :  { %v161_v52 = vadd.f32 %v160_v51, %v154_v48 }
  0x49   :  { %162 = vadd.xlane.f32.xlu0 %v161_v52 }
  0xa4   :  { %v166_v53 = vpop.xlane.xlu0 %165 }
  0xa5   :  { %v172_v54 = vpop.xlane.xlu1 %171 }
  0xa8   :  { %v169_v55 = vpop.xlane.xlu0 %168 }
  0xa9   :  { %v177_v49 = vsel %vm176_vm1, %v166_v53, %v169_v55  ;;  %v175_v56 = vpop.xlane.xlu1 %174 }
  0xaa   :  { %v179_v57 = vsel %vm178_vm2, %v177_v49, %v172_v54 }
  0xab   :  { %v181_v58 = vsel %vm180_vm3, %v179_v57, %v175_v56 }
  0xac   :  { %v182_v59 = vmul.f32 0.00390625, %v181_v58 }
  0xae   :  { %v183_v60 = vsub.f32 1.0, %v182_v59 }
  0xd2   :  { %v163_v61 = vpop.xlane.xlu0 %162 }
  0xd3   :  { %v184_v62 = vmul.f32 %v183_v60, %v163_v61 }
  0xd5   :  { %v186_v63 = vsel %vm49_vm0, %v184_v62, 0.0 }
  0xd6   :  { %v187_v0 = vrot.slane %v186_v63, 4 }
  0xd8   :  { %v188_v1 = vadd.f32 %v187_v0, %v186_v63 }
  0xda   :  { %v189_v2 = vrot.slane %v188_v1, 2 }
  0xdc   :  { %v190_v3 = vadd.f32 %v189_v2, %v188_v1 }
  0xde   :  { %v191_v4 = vrot.slane %v190_v3, 1 }
  0xe0   :  { %v192_v6 = vadd.f32 %v191_v4, %v190_v3 }
  0xe2   :  { %v194_v7 = vadd.f32 %v193_v5, %v192_v6 }
  0xe4   :  { %195 = vst.msk [vmem:[%s322_s2] sm:$0xff] %vm49_vm0, %v194_v7 }
  0xe5   :  { %200 = vsyncpa [#allocation3], 1 }
  0xe6   :  { %201 = vsyncpa [#allocation5], 1 }

</bundles_post_ra>
